<compile_context>
chip_gen: v6e
topology: v6e:2x2x1
jax: 0.10.0
libtpu: 0.0.40
codegen_flags: <defaults>
</compile_context>

<pallas_src>
import functools

import jax
import jax.numpy as jnp
from jax.experimental import pallas as pl
from jax.experimental.pallas import tpu as pltpu

# Full-precision f32 matmuls for the (non-Pallas) reference / wrapper ops.
jax.config.update("jax_default_matmul_precision", "highest")

_VMEM_LIMIT = 48 * 1024 * 1024  # leaves headroom inside v7x's 64 MiB VMEM


# ---------------------------------------------------------------------------
# Tiling helpers
# ---------------------------------------------------------------------------
def _round_up(x, m):
    return (x + m - 1) // m * m


def _pick_row_tile(m, target=512):
    """Row tile for the linear kernels: multiple of 8 (or the full M), and at
    least 2 blocks when possible so both v7x TensorCores get work."""
    if m >= 2 * target:
        return target
    if m >= 16:
        return _round_up((m + 1) // 2, 8)
    return m


def _pick_col_tile(cout, target=512):
    # Either the full Cout (exempt from the 128-divisibility rule) or 512.
    return cout if cout <= target else target


def _seq_tiles(length):
    """Returns (TQ, TK, padded_L). TQ/TK are multiples of 8 and both divide
    padded_L; padded keys are masked in-kernel."""
    if length <= 512:
        t = _round_up(length, 8)
        return t, t, t
    return 512, 256, _round_up(length, 512)


# ---------------------------------------------------------------------------
# Kernels 1 & 3: fused linear projection  y = x @ W^T + b   (M x Cout tiled)
# ---------------------------------------------------------------------------
def _linear_kernel(x_ref, w_ref, b_ref, o_ref):
    # x: (TM, Cin), w: (TN, Cin), b: (1, TN) -> o: (TM, TN) = x @ w.T + b
    acc = jax.lax.dot_general(
        x_ref[...],
        w_ref[...],
        dimension_numbers=(((1,), (1,)), ((), ())),   # contract Cin with Cin
        preferred_element_type=jnp.float32,
    )
    o_ref[...] = (acc + b_ref[...].astype(jnp.float32)).astype(o_ref.dtype)


def pallas_linear(x2d, w, b):
    M, Cin = x2d.shape
    Cout, Cin2 = w.shape
    assert Cin == Cin2
    TM = _pick_row_tile(M)
    TN = _pick_col_tile(Cout)
    # TODO(synk): for very large Cin add a K-reduction grid axis with an f32
    # VMEM accumulator instead of keeping the full Cin extent per block.
    return pl.pallas_call(
        _linear_kernel,
        out_shape=jax.ShapeDtypeStruct((M, Cout), x2d.dtype),
        grid_spec=pltpu.PrefetchScalarGridSpec(
            num_scalar_prefetch=0,
            grid=(pl.cdiv(M, TM), pl.cdiv(Cout, TN)),
            in_specs=[
                pl.BlockSpec((TM, Cin), lambda i, j: (i, 0)),
                pl.BlockSpec((TN, Cin), lambda i, j: (j, 0)),
                pl.BlockSpec((1, TN), lambda i, j: (0, j)),
            ],
            out_specs=pl.BlockSpec((TM, TN), lambda i, j: (i, j)),
        ),
        compiler_params=pltpu.CompilerParams(
            dimension_semantics=("parallel", "parallel"),
            vmem_limit_bytes=_VMEM_LIMIT),
    )(x2d, w, b.reshape(1, Cout))


# ---------------------------------------------------------------------------
# Kernel 2: flash-style SDPA reading q/k/v straight from the qkv projection
# ---------------------------------------------------------------------------
def _flash_kernel(q_ref, k_ref, v_ref, o_ref, q_sc, m_sc, l_sc, acc_sc, *,
                  scale, kv_len):
    # q_ref: (TQ, H, D)   k_ref / v_ref: (TK, H, D)   o_ref: (TQ, 1, H, D)
    kv = pl.program_id(2)

    @pl.when(kv == 0)
    def _():
        # Scale + head-major transpose of q once per (batch, q-block):
        # hoisted out of the kv loop into VMEM scratch.
        q = jnp.transpose(q_ref[...], (1, 0, 2))            # (H, TQ, D)
        q_sc[...] = (q * scale).astype(q_sc.dtype)
        m_sc[...] = jnp.full(m_sc.shape, -jnp.inf, jnp.float32)
        l_sc[...] = jnp.zeros(l_sc.shape, jnp.float32)
        acc_sc[...] = jnp.zeros(acc_sc.shape, jnp.float32)

    k = jnp.transpose(k_ref[...], (1, 0, 2))                 # (H, TK, D) VMEM
    v = jnp.transpose(v_ref[...], (1, 0, 2))                 # (H, TK, D) VMEM

    # (H, TQ, TK) batched contraction over D; f32 MXU accumulation.
    s = jnp.einsum("hqd,hkd->hqk", q_sc[...], k,
                   preferred_element_type=jnp.float32)

    if kv_len is not None:                                   # mask padded keys
        tk = k.shape[1]
        col = kv * tk + jax.lax.broadcasted_iota(jnp.int32, s.shape, 2)
        s = jnp.where(col < kv_len, s, -1e30)

    m_prev = m_sc[...]                                       # (H, TQ, 1) f32
    m_new = jnp.maximum(m_prev, jnp.max(s, axis=-1, keepdims=True))
    alpha = jnp.exp(m_prev - m_new)
    p = jnp.exp(s - m_new)                                   # f32

    l_sc[...] = alpha * l_sc[...] + jnp.sum(p, axis=-1, keepdims=True)
    acc_sc[...] = alpha * acc_sc[...] + jnp.einsum(
        "hqk,hkd->hqd", p.astype(v.dtype), v,
        preferred_element_type=jnp.float32)
    m_sc[...] = m_new

    @pl.when(kv == pl.num_programs(2) - 1)
    def _():
        o = acc_sc[...] / l_sc[...]                          # exact normalize
        h, tq, d = o.shape
        o = jnp.transpose(o, (1, 0, 2)).reshape(tq, 1, h, d)
        # TODO(synk): for D < 128 a lane-dense (TQ, H*D) output block would
        # avoid masked stores; kept (TQ,1,H,D) so the last two block dims are
        # always full / layout-legal.
        o_ref[...] = o.astype(o_ref.dtype)


def pallas_sdpa(qkv, num_heads, scale):
    # qkv: (L, N, 3C) straight from the in-projection; C = num_heads * D.
    L, N, three_c = qkv.shape
    H = num_heads
    D = three_c // (3 * H)
    TQ, TK, L_pad = _seq_tiles(L)
    kv_len = None if L_pad == L else L

    # Free reshape: the projection's last dim is laid out [q|k|v][H][D], so
    # (L, N, 3C) == (L, N*3*H, D) row-major.  The BlockSpecs pick the plane
    # (q/k/v), batch and head group directly — no split / transpose in HBM.
    # TODO(synk): H % 8 != 0 would need head padding or a squeezed 5-D layout.
    qkv = qkv.reshape(L, N * 3 * H, D)
    if L_pad != L:
        qkv = jnp.pad(qkv, ((0, L_pad - L), (0, 0), (0, 0)))

    grid = (N, L_pad // TQ, L_pad // TK)
    out = pl.pallas_call(
        functools.partial(_flash_kernel, scale=scale, kv_len=kv_len),
        out_shape=jax.ShapeDtypeStruct((L_pad, N, H, D), qkv.dtype),
        grid_spec=pltpu.PrefetchScalarGridSpec(
            num_scalar_prefetch=0,
            grid=grid,
            in_specs=[
                pl.BlockSpec((TQ, H, D), lambda n, i, j: (i, 3 * n, 0)),
                pl.BlockSpec((TK, H, D), lambda n, i, j: (j, 3 * n + 1, 0)),
                pl.BlockSpec((TK, H, D), lambda n, i, j: (j, 3 * n + 2, 0)),
            ],
            out_specs=pl.BlockSpec((TQ, 1, H, D),
                                   lambda n, i, j: (i, n, 0, 0)),
            scratch_shapes=[
                pltpu.VMEM((H, TQ, D), qkv.dtype),    # scaled, head-major q
                pltpu.VMEM((H, TQ, 1), jnp.float32),  # running max m
                pltpu.VMEM((H, TQ, 1), jnp.float32),  # running sum l
                pltpu.VMEM((H, TQ, D), jnp.float32),  # running accumulator
            ],
        ),
        compiler_params=pltpu.CompilerParams(
            dimension_semantics=("parallel", "parallel", "arbitrary"),
            vmem_limit_bytes=_VMEM_LIMIT),
    )(qkv, qkv, qkv)

    if L_pad != L:
        out = out[:L]
    return out                                               # (L, N, H, D)


# ---------------------------------------------------------------------------
# Module forward (only free reshapes between the pallas calls)
# ---------------------------------------------------------------------------
def attention_forward(x, params, num_heads):
    # x: (L, N, C)
    L, N, C = x.shape
    H = num_heads
    assert C % H == 0
    D = C // H
    scale = D ** (-0.5)

    # in-projection -> (L*N, 3C), then a free reshape to (L, N, 3C)
    qkv = pallas_linear(x.reshape(L * N, C), params["in_w"], params["in_b"])
    qkv = qkv.reshape(L, N, 3 * C)

    # flash SDPA; output already in (L, N, H, D) == (L, N, C) layout
    o = pallas_sdpa(qkv, H, scale)
    y = o.reshape(L * N, C)                                  # free reshape

    # out-projection
    out = pallas_linear(y, params["out_w"], params["out_b"])
    return out.reshape(L, N, C)


# ---------------------------------------------------------------------------
# Pure-JAX reference (mirrors the PyTorch forward) for the correctness check
# ---------------------------------------------------------------------------
def attention_reference(x, params, num_heads):
    L, N, C = x.shape
    H = num_heads
    D = C // H
    scale = D ** (-0.5)
    qkv = x.reshape(L * N, C) @ params["in_w"].T + params["in_b"]
    qkv = qkv.reshape(L, N, 3 * C)
    q, k, v = jnp.split(qkv, 3, axis=-1)
    q = q.reshape(L, N * H, D).transpose(1, 0, 2) * scale
    k = k.reshape(L, N * H, D).transpose(1, 0, 2)
    v = v.reshape(L, N * H, D).transpose(1, 0, 2)
    attn = jnp.einsum("bld,bmd->blm", q, k)
    attn = jax.nn.softmax(attn, axis=-1)
    o = jnp.einsum("blm,bmd->bld", attn, v)
    y = o.transpose(1, 0, 2).reshape(L * N, C)
    out = y @ params["out_w"].T + params["out_b"]
    return out.reshape(L, N, C)


if __name__ == "__main__":
    # Small shapes consistent with the module's forward: (L, N, C)
    L, N, C = 8, 2, 32
    num_heads = 8
    head_dim = C // num_heads
    scale = head_dim ** (-0.5)

    key = jax.random.PRNGKey(0)
    k_x, k_in, k_ow, k_ob = jax.random.split(key, 4)

    # Deterministic synthetic parameters (shapes follow the module's __init__)
    params = {
        "in_w": jax.random.normal(k_in, (3 * C, C), jnp.float32) * scale,  # in_proj_weight
        "in_b": jnp.zeros((3 * C,), jnp.float32),                          # in_proj_bias
        "out_w": jax.random.normal(k_ow, (C, C), jnp.float32) * 0.02,      # out_proj.weight
        "out_b": jax.random.normal(k_ob, (C,), jnp.float32) * 0.01,        # out_proj.bias
    }
    # TODO(synk): scaled_cosine / scale_heads / attn_mask / dropout branches are
    # inactive under the default constructor args and are not implemented here.

    x = jax.random.normal(k_x, (L, N, C), jnp.float32)

    out = attention_forward(x, params, num_heads)
    out = jax.block_until_ready(out)

    ref = attention_reference(x, params, num_heads)
    assert out.shape == (L, N, C)
    assert jnp.allclose(out, ref, atol=2e-3, rtol=2e-3), "mismatch vs reference"

    print("KERNEL_OK")
</pallas_src>

<mosaic_0001>
module attributes {stable_mosaic.version = 11 : i64} {
  func.func @_linear_kernel(%arg0: i32, %arg1: i32, %arg2: memref<8x32xf32, #tpu.memory_space<vmem>>, %arg3: memref<96x32xf32, #tpu.memory_space<vmem>>, %arg4: memref<1x96xf32, #tpu.memory_space<vmem>>, %arg5: memref<8x96xf32, #tpu.memory_space<vmem>>) attributes {dimension_semantics = [#tpu.dimension_semantics<parallel>, #tpu.dimension_semantics<parallel>], iteration_bounds = array<i64: 2, 1>, scalar_prefetch = 0 : i64, scratch_operands = 0 : i64, tpu.core_type = #tpu.core_type<tc>, window_params = [{transform_indices = @transform_0, window_bounds = array<i64: 8, 32>}, {transform_indices = @transform_1, window_bounds = array<i64: 96, 32>}, {transform_indices = @transform_2, window_bounds = array<i64: 1, 96>}, {transform_indices = @transform_3, window_bounds = array<i64: 8, 96>}]} {
    %c0 = arith.constant 0 : index
    %c0_0 = arith.constant 0 : index
    %0 = vector.load %arg2[%c0, %c0_0] : memref<8x32xf32, #tpu.memory_space<vmem>>, vector<8x32xf32>
    %c0_1 = arith.constant 0 : index
    %c0_2 = arith.constant 0 : index
    %1 = vector.load %arg3[%c0_1, %c0_2] : memref<96x32xf32, #tpu.memory_space<vmem>>, vector<96x32xf32>
    %cst = arith.constant dense<0.000000e+00> : vector<8x96xf32>
    %2 = tpu.matmul %0, %1, %cst {dimension_numbers = #tpu.dot_dimension_numbers<[1], [1], [0], [0], [0, 0, 1, 0], [], []>, precision = #tpu.contract_precision<fp32>} : vector<8x32xf32>, vector<96x32xf32>, vector<8x96xf32> -> vector<8x96xf32>
    %c0_3 = arith.constant 0 : index
    %c0_4 = arith.constant 0 : index
    %3 = vector.load %arg4[%c0_3, %c0_4] : memref<1x96xf32, #tpu.memory_space<vmem>>, vector<1x96xf32>
    %4 = vector.broadcast %3 : vector<1x96xf32> to vector<8x96xf32>
    %5 = arith.addf %2, %4 : vector<8x96xf32>
    %c0_5 = arith.constant 0 : index
    %c0_6 = arith.constant 0 : index
    %6 = vector.load %arg5[%c0_5, %c0_6] : memref<8x96xf32, #tpu.memory_space<vmem>>, vector<8x96xf32>
    tpu.vector_store %arg5[%c0_5, %c0_6], %5 {strides = array<i32>} : memref<8x96xf32, #tpu.memory_space<vmem>>, vector<8x96xf32>,
    return
  }
  func.func @transform_0(%arg0: i32, %arg1: i32) -> (i32, i32) {
    %c0_i32 = arith.constant 0 : i32
    %c0_i32_0 = arith.constant 0 : i32
    return %arg0, %c0_i32 : i32, i32
  }
  func.func @transform_1(%arg0: i32, %arg1: i32) -> (i32, i32) {
    %c0_i32 = arith.constant 0 : i32
    %c0_i32_0 = arith.constant 0 : i32
    return %arg1, %c0_i32 : i32, i32
  }
  func.func @transform_2(%arg0: i32, %arg1: i32) -> (i32, i32) {
    %c0_i32 = arith.constant 0 : i32
    %c0_i32_0 = arith.constant 0 : i32
    return %c0_i32, %arg1 : i32, i32
  }
  func.func @transform_3(%arg0: i32, %arg1: i32) -> (i32, i32) {
    %c0_i32 = arith.constant 0 : i32
    return %arg0, %arg1 : i32, i32
  }
}

</mosaic_0001>

<bundles_post_ra>
// kernel: tpu_custom_call.1
= control target key start
LH: loop header
LB: loop body
LE: loop exit
PB: predicated region body
PF: predicated region fallthrough
CT: control target
= control target key end

     0   :  { %8 = vsyncpa [#allocation3], 0  ;;  %s1825_s0 = inlined_call_operand.vmem [shape: f32[16,32], index: 0, kind: input, shape index: {}]   ;;  %s1826_s1 = inlined_call_operand.vmem [shape: f32[96,32], index: 1, kind: input, shape index: {}]   ;;  %s1827_s2 = inlined_call_operand.vmem [shape: f32[1,96], index: 2, kind: input, shape index: {}]   ;;  %s1828_s3 = inlined_call_operand.hbm [shape: f32[16,96], index: 3, kind: output, shape index: {}]  }
   0x1   :  { %10 = vsyncpa [#allocation3 + $0x1], 0  ;;  %s1389_s12 = smov 0   ;;  %s1391_s13 = smov 0  }
   0x2   :  { %s1393_s14 = smov 0   ;;  %s1395_s15 = smov 0  }
   0x3   :  { %s1397_s16 = smov 0   ;;  %s1399_s17 = smov 0  }
   0x4 LB: > { %s977_s18 = sadd.s32 4294967295, %s1364_s17   ;;  %s978_s19 = sadd.s32 4294967294, %s1364_s17   ;;  %s1364_s17 = sphi %s1399_s17, %s16_s17   ;;  %s1360_s16 = sphi %s1397_s16, %s1835_s16   ;;  %s1356_s15 = sphi %s1395_s15, %s1834_s15   ;;  %s1352_s14 = sphi %s1393_s14, %s1833_s14   ;;  %s1348_s13 = sphi %s1391_s13, %s1832_s13   ;;  %s1344_s12 = sphi %s1389_s12, %s1831_s12  }
   0x5   : > { %s28_s20 = sadd.s32 1, %s1360_s16  ;;  %s115_s21 = sadd.s32 1, %s1352_s14 }
   0x6   : > { %p30_p0 = scmp.ge.s32.totalorder %s28_s20, 2  ;;  %p125_p1 = scmp.ne.s32.totalorder %s1352_s14, %s1348_s13 }
   0x7   : > { %p126_p2 = scmp.eq.s32.totalorder %s977_s18, 1  ;;  %p131_p3 = scmp.ne.s32.totalorder %s1348_s13, %s1344_s12 }
   0x8   : > { %s1837_s20 = smov (%p30_p0, %s28_s20), 0  ;;  %p132_p5 = scmp.eq.s32.totalorder %s978_s19, 1 }
   0x9   : > { %p1429_p4 = por %p126_p2, %p125_p1  ;;  %s110_s23 = ssub.s32 %s1360_s16, %s1837_s20 }
   0xa   : > { %p983_p6 = scmp.ge.s32.totalorder %s1364_s17, 1  ;;  %p113_p7 = scmp.eq.s32.totalorder %s110_s23, 0 }
   0xb   : > { %p1436_p8 = por %p132_p5, %p131_p3  ;;  %p172_p9 = scmp.lt.s32.totalorder %s1364_s17, 3 }
   0xc   : > { %s1442_s25 = scalar_select %p113_p7, %s1352_s14, %s115_s21  }
   0xd   : > { %p173_p10 = pnand %p983_p6, %p172_p9 }
   0xe   : > { %p203_p11 = scmp.lt.s32.totalorder (!%p173_p10), %s1356_s15, 1  ;;  %s200_s19 = sand.u32 (!%p173_p10), 1, %s1348_s13  }
   0xf   : > { %176 = sbr.rel (%p173_p10) target bundleno = 383 (0x17f), region = 32  ;;  %s984_s21 = sshll.u32 (!%p173_p10), %s200_s19, 3 }
  0x10   : > { %s202_s26 = scalar_lea.vmem (!%p173_p10), [#allocation2], %s984_s21  ;;  %s868_s4 = scalar_lea.sflag (!%p173_p10), [#allocation3], %s200_s19 }
  0x11   : > { %s882_s27 = sshll.u32 (!%p173_p10), %s202_s26, 4  ;;  %s883_s27 = int_to_ptr.vmem [resolvable:$true] %s882_s27 }
  0x12   : > { %s1288_s5 = scalar_lea.vmem (!%p173_p10), %s883_s27, 128 }
  0x13   : > { %p1289_p12 = scmp.ne.s32.totalorder (!%p173_p10), %s883_s27, %s1288_s5 }
  0x14   : > { %v228_v0 = vld [vmem:[%s1826_s1 + $0x58] sm:$0xff]  ;;  %vm236_vm0 = vcmask 261120   ;;  %v227_v1 = vld [vmem:[%s1826_s1 + $0x50] sm:$0xff]  ;;  %v226_v2 = vld [vmem:[%s1826_s1 + $0x48] sm:$0xff]  ;;  %v1366_v3 = vmov 0.0   ;;  %vm1367_vm1 = vmmov 0  }
  0x15   : > { %1069 = vmatprep.subr.mxu0 %v1366_v3  ;;  %v274_v4 = vsel %vm236_vm0, %v228_v0, 0  ;;  %v271_v5 = vsel %vm236_vm0, %v227_v1, 0  ;;  %1096 = vmatprep.subr.mxu1 %v1366_v3  ;;  %v268_v6 = vsel %vm236_vm0, %v226_v2, 0  ;;  %v225_v7 = vld [vmem:[%s1826_s1 + $0x40] sm:$0xff]  ;;  %v224_v8 = vld [vmem:[%s1826_s1 + $0x38] sm:$0xff]  ;;  %v223_v18 = vld [vmem:[%s1826_s1 + $0x30] sm:$0xff]  ;;  %p1290_p13 = pnand %p1289_p12, %p1429_p4 }
  0x16   : > { %v1464_v9 = vand.u32 4294901760, %v274_v4  ;;  %v1466_v10 = vand.u32 4294901760, %v271_v5  ;;  %v1468_v11 = vand.u32 4294901760, %v268_v6  ;;  %v265_v12 = vsel %vm236_vm0, %v225_v7, 0  ;;  %1093 = vmatprep.mubr.msk.f32.mxu0 %vm1367_vm1, %v1366_v3  ;;  %1120 = vmatprep.mubr.msk.f32.mxu1 %vm1367_vm1, %v1366_v3  ;;  %v222_v27 = vld [vmem:[%s1826_s1 + $0x28] sm:$0xff]  ;;  %v221_v35 = vld [vmem:[%s1826_s1 + $0x20] sm:$0xff] }
  0x17   : > { %v1475_v13 = vand.u32 4294901760, %v265_v12  ;;  %v262_v16 = vsel %vm236_vm0, %v224_v8, 0  ;;  %v259_v22 = vsel %vm236_vm0, %v223_v18, 0  ;;  %v256_v30 = vsel %vm236_vm0, %v222_v27, 0  ;;  %s204_s23 = scalar_select %p203_p11, %s1356_s15, 1  ;;  %v220_v42 = vld [vmem:[%s1826_s1 + $0x18] sm:$0xff] }
  0x18   : > { %1070 = vmatpush3.xpose.msra.mxu0 %v1464_v9  ;;  %v1479_v14 = vsub.f32 %v274_v4, %v1464_v9  ;;  %v1482_v15 = vsub.f32 %v271_v5, %v1466_v10  ;;  %v1486_v17 = vsub.f32 %v268_v6, %v1468_v11  ;;  %v1494_v21 = vand.u32 4294901760, %v262_v16  ;;  %v219_v49 = vld [vmem:[%s1826_s1 + $0x10] sm:$0xff]  ;;  %v218_v56 = vld [vmem:[%s1826_s1 + $0x8] sm:$0xff]  ;;  %v217_v0 = vld [vmem:[%s1826_s1] sm:$0xff]  ;;  %p1291_p0 = pneg %p1290_p13 }
  0x19   : > { %1071 = vmatprep.subr.mxu0 %v1366_v3  ;;  %v1506_v26 = vsub.f32 %v265_v12, %v1475_v13  ;;  %v1512_v29 = vand.u32 4294901760, %v259_v22  ;;  %v1529_v36 = vand.u32 4294901760, %v256_v30  ;;  %v253_v41 = vsel %vm236_vm0, %v221_v35, 0  ;;  %s985_s28 = sshll.u32 %s204_s23, 3  ;;  %s988_s23 = sshll.u32 %s1356_s15, 7 }
  0x1a   : > { %v374_v19 = vand.u32 4294901760, %v1479_v14  ;;  %v381_v20 = vand.u32 4294901760, %v1482_v15  ;;  %v388_v25 = vand.u32 4294901760, %v1486_v17  ;;  %v1522_v34 = vsub.f32 %v262_v16, %v1494_v21  ;;  %s206_s6 = scalar_lea.vmem %s1825_s0, %s985_s28  ;;  %s1785_s30 = scalar_lea.hbm %s1828_s3, %s988_s23 }
  0x1b   : > { %v395_v33 = vand.u32 4294901760, %v1506_v26  ;;  %v1532_v37 = vsub.f32 %v259_v22, %v1512_v29  ;;  %v1546_v43 = vand.u32 4294901760, %v253_v41  ;;  %v250_v47 = vsel %vm236_vm0, %v220_v42, 0  ;;  %v216_v57 = vld [vmem:[%s206_s6] sm:$0xff]  ;;  %s1368_s15 = smov [#allocation2]  }
  0x1c   : > { %1072 = vmatpush3.xpose.msra.mxu0 %v1466_v10  ;;  %v375_v23 = vsub.f32 %v1479_v14, %v374_v19  ;;  %v382_v24 = vsub.f32 %v1482_v15, %v381_v20  ;;  %v389_v32 = vsub.f32 %v1486_v17, %v388_v25  ;;  %v402_v40 = vand.u32 4294901760, %v1522_v34  ;;  %s1292_s6 = sshll.u32 %s1368_s15, 4  ;;  %s1293_s6 = int_to_ptr.vmem [resolvable:$false] %s1292_s6 }
  0x1d   : > { %1073 = vmatprep.subr.mxu0 %v1366_v3  ;;  %v396_v39 = vsub.f32 %v1506_v26, %v395_v33  ;;  %v409_v44 = vand.u32 4294901760, %v1532_v37  ;;  %v1555_v48 = vsub.f32 %v256_v30, %v1529_v36  ;;  %v1568_v51 = vand.u32 4294901760, %v250_v47  ;;  %s1294_s7 = scalar_lea.vmem %s1293_s6, 256  ;;  %p1295_p1 = scmp.lt.s32.totalorder %s883_s27, %s1293_s6 }
  0x1e   : > { %v376_v28 = vand.u32 4294901760, %v375_v23  ;;  %v383_v31 = vand.u32 4294901760, %v382_v24  ;;  %v390_v38 = vand.u32 4294901760, %v389_v32  ;;  %v403_v46 = vsub.f32 %v1522_v34, %v402_v40  ;;  %p1296_p2 = scmp.lt.s32.totalorder %s1294_s7, %s1288_s5 }
  0x1f   : > { %v397_v45 = vand.u32 4294901760, %v396_v39  ;;  %v410_v50 = vsub.f32 %v1532_v37, %v409_v44  ;;  %v416_v53 = vand.u32 4294901760, %v1555_v48  ;;  %v247_v54 = vsel %vm236_vm0, %v219_v49, 0 }
  0x20   : > { %1074 = vmatpush3.xpose.msra.mxu0 %v1468_v11  ;;  %1097 = vmatpush3.xpose.msra.mxu1 %v376_v28  ;;  %v404_v52 = vand.u32 4294901760, %v403_v46  ;;  %v1574_v55 = vsub.f32 %v253_v41, %v1546_v43  ;;  %v1581_v59 = vand.u32 4294901760, %v247_v54  ;;  %v244_v60 = vsel %vm236_vm0, %v218_v56, 0  ;;  %p1297_p3 = por %p1296_p2, %p1295_p1 }
  0x21   : > { %1075 = vmatprep.subr.mxu0 %v1366_v3  ;;  %1098 = vmatprep.subr.mxu1 %v1366_v3  ;;  %v411_v58 = vand.u32 4294901760, %v410_v50  ;;  %v417_v61 = vsub.f32 %v1555_v48, %v416_v53  ;;  %v1590_v63 = vsub.f32 %v250_v47, %v1568_v51  ;;  %v238_v1 = vsel %vm236_vm0, %v216_v57, 0 }
  0x22   : > { %v423_v62 = vand.u32 4294901760, %v1574_v55  ;;  %v1598_v2 = vand.u32 4294901760, %v244_v60  ;;  %v241_v4 = vsel %vm236_vm0, %v217_v0, 0  ;;  %v1601_v5 = vand.u32 4294901760, %v238_v1  ;;  %p1298_p5 = pnand %p1297_p3, %p1291_p0 }
  0x23   : > { %v418_v6 = vand.u32 4294901760, %v417_v61  ;;  %v430_v8 = vand.u32 4294901760, %v1590_v63  ;;  %v1609_v12 = vsub.f32 %v247_v54, %v1581_v59  ;;  %v1613_v16 = vand.u32 4294901760, %v241_v4 }
  0x24   : > { %1076 = vmatpush3.xpose.msra.mxu0 %v1475_v13  ;;  %1099 = vmatpush3.xpose.msra.mxu1 %v383_v31  ;;  %v424_v7 = vsub.f32 %v1574_v55, %v423_v62  ;;  %v1616_v18 = vsub.f32 %v238_v1, %v1601_v5  ;;  %v1624_v27 = vsub.f32 %v244_v60, %v1598_v2  ;;  %vm865_vm2 = vcmask 785408  }
  0x25   : > { %1077 = vmatprep.subr.mxu0 %v1366_v3  ;;  %1100 = vmatprep.subr.mxu1 %v1366_v3  ;;  %v431_v23 = vsub.f32 %v1590_v63, %v430_v8  ;;  %v437_v24 = vand.u32 4294901760, %v1609_v12  ;;  %v1635_v35 = vsub.f32 %v241_v4, %v1613_v16 }
  0x26   : > { %v425_v22 = vand.u32 4294901760, %v424_v7  ;;  %v355_v28 = vand.u32 4294901760, %v1616_v18  ;;  %v444_v32 = vand.u32 4294901760, %v1624_v27 }
  0x27   : > { %v432_v30 = vand.u32 4294901760, %v431_v23  ;;  %v438_v31 = vsub.f32 %v1609_v12, %v437_v24  ;;  %v451_v42 = vand.u32 4294901760, %v1635_v35 }
  0x28   : > { %1078 = vmatpush3.xpose.msra.mxu0 %v1494_v21  ;;  %1101 = vmatpush3.xpose.msra.mxu1 %v390_v38  ;;  %v356_v38 = vsub.f32 %v1616_v18, %v355_v28  ;;  %v445_v41 = vsub.f32 %v1624_v27, %v444_v32 }
  0x29   : > { %1079 = vmatprep.subr.mxu0 %v1366_v3  ;;  %1102 = vmatprep.subr.mxu1 %v1366_v3  ;;  %v439_v39 = vand.u32 4294901760, %v438_v31  ;;  %v452_v47 = vsub.f32 %v1635_v35, %v451_v42 }
  0x2a   : > { %v446_v46 = vand.u32 4294901760, %v445_v41 }
  0x2b   : > { %v453_v49 = vand.u32 4294901760, %v452_v47 }
  0x2c   : > { %1080 = vmatpush3.xpose.msra.mxu0 %v1512_v29  ;;  %1103 = vmatpush3.xpose.msra.mxu1 %v397_v45  ;;  %v357_v45 = vand.u32 4294901760, %v356_v38 }
  0x2d   : > { %1081 = vmatprep.subr.mxu0 %v1366_v3  ;;  %1104 = vmatprep.subr.mxu1 %v1366_v3 }
  0x30   : > { %1082 = vmatpush3.xpose.msra.mxu0 %v1529_v36  ;;  %1105 = vmatpush3.xpose.msra.mxu1 %v404_v52 }
  0x31   : > { %1083 = vmatprep.subr.mxu0 %v1366_v3  ;;  %1106 = vmatprep.subr.mxu1 %v1366_v3 }
  0x34   : > { %1084 = vmatpush3.xpose.msra.mxu0 %v1546_v43  ;;  %1107 = vmatpush3.xpose.msra.mxu1 %v411_v58 }
  0x35   : > { %1085 = vmatprep.subr.mxu0 %v1366_v3  ;;  %1108 = vmatprep.subr.mxu1 %v1366_v3 }
  0x38   : > { %1086 = vmatpush3.xpose.msra.mxu0 %v1568_v51  ;;  %1109 = vmatpush3.xpose.msra.mxu1 %v418_v6 }
  0x39   : > { %1087 = vmatprep.subr.mxu0 %v1366_v3  ;;  %1110 = vmatprep.subr.mxu1 %v1366_v3 }
  0x3c   : > { %1088 = vmatpush3.xpose.msra.mxu0 %v1581_v59  ;;  %1111 = vmatpush3.xpose.msra.mxu1 %v425_v22 }
  0x3d   : > { %1089 = vmatprep.subr.mxu0 %v1366_v3  ;;  %1112 = vmatprep.subr.mxu1 %v1366_v3 }
  0x40   : > { %1090 = vmatpush3.xpose.msra.mxu0 %v1598_v2  ;;  %1113 = vmatpush3.xpose.msra.mxu1 %v432_v30 }
  0x41   : > { %1091 = vmatprep.subr.mxu0 %v1366_v3  ;;  %1114 = vmatprep.subr.mxu1 %v1366_v3 }
  0x44   : > { %1092 = vmatpush3.xpose.msra.mxu0 %v1613_v16  ;;  %1115 = vmatpush3.xpose.msra.mxu1 %v439_v39 }
  0x45   : > { %1116 = vmatprep.subr.mxu1 %v1366_v3  ;;  %1123 = vmatprep.subr.mxu0 %v1366_v3 }
  0x47   : > { %1094 = vmatmul.mubr.f32.vlgmr.msra.gmra.mxu0 %v357_v45 }
  0x48   : > { %1117 = vmatpush3.xpose.msra.mxu1 %v446_v46  ;;  %1124 = vmatpush3.xpose.msra.mxu0 %v1479_v14 }
  0x49   : > { %1118 = vmatprep.subr.mxu1 %v1366_v3  ;;  %1125 = vmatprep.subr.mxu0 %v1366_v3 }
  0x4a   : > { %1147 = vmatprep.mubr.msk.f32.mxu0 %vm1367_vm1, %v1366_v3 }
  0x4c   : > { %1119 = vmatpush3.xpose.msra.mxu1 %v453_v49  ;;  %1126 = vmatpush3.xpose.msra.mxu0 %v1482_v15 }
  0x4d   : > { %1127 = vmatprep.subr.mxu0 %v1366_v3  ;;  %1150 = vmatprep.subr.mxu1 %v1366_v3 }
  0x4f   : > { %1121 = vmatmul.mubr.f32.vlgmr.msra.gmra.mxu1 %v1601_v5 }
  0x50   : > { %1128 = vmatpush3.xpose.msra.mxu0 %v1486_v17  ;;  %1151 = vmatpush3.xpose.msra.mxu1 %v1464_v9 }
  0x51   : > { %1129 = vmatprep.subr.mxu0 %v1366_v3  ;;  %1152 = vmatprep.subr.mxu1 %v1366_v3 }
  0x52   : > { %1174 = vmatprep.mubr.msk.f32.mxu1 %vm1367_vm1, %v1366_v3 }
  0x54   : > { %1130 = vmatpush3.xpose.msra.mxu0 %v1506_v26  ;;  %1153 = vmatpush3.xpose.msra.mxu1 %v1466_v10 }
  0x55   : > { %1131 = vmatprep.subr.mxu0 %v1366_v3  ;;  %1154 = vmatprep.subr.mxu1 %v1366_v3 }
  0x58   : > { %1132 = vmatpush3.xpose.msra.mxu0 %v1522_v34  ;;  %1155 = vmatpush3.xpose.msra.mxu1 %v1468_v11 }
  0x59   : > { %1133 = vmatprep.subr.mxu0 %v1366_v3  ;;  %1156 = vmatprep.subr.mxu1 %v1366_v3 }
  0x5c   : > { %1134 = vmatpush3.xpose.msra.mxu0 %v1532_v37  ;;  %1157 = vmatpush3.xpose.msra.mxu1 %v1475_v13 }
  0x5d   : > { %1135 = vmatprep.subr.mxu0 %v1366_v3  ;;  %1158 = vmatprep.subr.mxu1 %v1366_v3 }
  0x60   : > { %1136 = vmatpush3.xpose.msra.mxu0 %v1555_v48  ;;  %1159 = vmatpush3.xpose.msra.mxu1 %v1494_v21 }
  0x61   : > { %1137 = vmatprep.subr.mxu0 %v1366_v3  ;;  %1160 = vmatprep.subr.mxu1 %v1366_v3 }
  0x64   : > { %1138 = vmatpush3.xpose.msra.mxu0 %v1574_v55  ;;  %1161 = vmatpush3.xpose.msra.mxu1 %v1512_v29 }
  0x65   : > { %1139 = vmatprep.subr.mxu0 %v1366_v3  ;;  %1162 = vmatprep.subr.mxu1 %v1366_v3 }
  0x68   : > { %1140 = vmatpush3.xpose.msra.mxu0 %v1590_v63  ;;  %1163 = vmatpush3.xpose.msra.mxu1 %v1529_v36 }
  0x69   : > { %1141 = vmatprep.subr.mxu0 %v1366_v3  ;;  %1164 = vmatprep.subr.mxu1 %v1366_v3 }
  0x6c   : > { %1142 = vmatpush3.xpose.msra.mxu0 %v1609_v12  ;;  %1165 = vmatpush3.xpose.msra.mxu1 %v1546_v43 }
  0x6d   : > { %1143 = vmatprep.subr.mxu0 %v1366_v3  ;;  %1166 = vmatprep.subr.mxu1 %v1366_v3 }
  0x70   : > { %1144 = vmatpush3.xpose.msra.mxu0 %v1624_v27  ;;  %1167 = vmatpush3.xpose.msra.mxu1 %v1568_v51 }
  0x71   : > { %1145 = vmatprep.subr.mxu0 %v1366_v3  ;;  %1168 = vmatprep.subr.mxu1 %v1366_v3 }
  0x74   : > { %1146 = vmatpush3.xpose.msra.mxu0 %v1635_v35  ;;  %1169 = vmatpush3.xpose.msra.mxu1 %v1581_v59 }
  0x75   : > { %1170 = vmatprep.subr.mxu1 %v1366_v3  ;;  %1177 = vmatprep.subr.mxu0 %v1366_v3 }
  0x77   : > { %1148 = vmatmul.mubr.f32.vlgmr.msra.gmra.mxu0 %v1616_v18 }
  0x78   : > { %1171 = vmatpush3.xpose.msra.mxu1 %v1598_v2  ;;  %1178 = vmatpush3.xpose.msra.mxu0 %v374_v19 }
  0x79   : > { %1172 = vmatprep.subr.mxu1 %v1366_v3  ;;  %1179 = vmatprep.subr.mxu0 %v1366_v3 }
  0x7a   : > { %1201 = vmatprep.mubr.msk.f32.mxu0 %vm1367_vm1, %v1366_v3 }
  0x7c   : > { %1173 = vmatpush3.xpose.msra.mxu1 %v1613_v16  ;;  %1180 = vmatpush3.xpose.msra.mxu0 %v381_v20 }
  0x7d   : > { %1181 = vmatprep.subr.mxu0 %v1366_v3  ;;  %1204 = vmatprep.subr.mxu1 %v1366_v3 }
  0x7f   : > { %1175 = vmatmul.mubr.f32.vlgmr.msra.gmra.mxu1 %v355_v28 }
  0x80   : > { %1182 = vmatpush3.xpose.msra.mxu0 %v388_v25  ;;  %1205 = vmatpush3.xpose.msra.mxu1 %v1464_v9 }
  0x81   : > { %1183 = vmatprep.subr.mxu0 %v1366_v3  ;;  %1206 = vmatprep.subr.mxu1 %v1366_v3 }
  0x82   : > { %1228 = vmatprep.mubr.msk.f32.mxu1 %vm1367_vm1, %v1366_v3 }
  0x84   : > { %1184 = vmatpush3.xpose.msra.mxu0 %v395_v33  ;;  %1207 = vmatpush3.xpose.msra.mxu1 %v1466_v10  ;;  %v986_v10 = vld [vmem:[%s1827_s2] ss:$0 sm:$0xff] }
  0x85   : > { %1185 = vmatprep.subr.mxu0 %v1366_v3  ;;  %1208 = vmatprep.subr.mxu1 %v1366_v3 }
  0x88   : > { %1186 = vmatpush3.xpose.msra.mxu0 %v402_v40  ;;  %1209 = vmatpush3.xpose.msra.mxu1 %v1468_v11 }
  0x89   : > { %1187 = vmatprep.subr.mxu0 %v1366_v3  ;;  %1210 = vmatprep.subr.mxu1 %v1366_v3 }
  0x8c   : > { %1188 = vmatpush3.xpose.msra.mxu0 %v409_v44  ;;  %1211 = vmatpush3.xpose.msra.mxu1 %v1475_v13 }
  0x8d   : > { %1189 = vmatprep.subr.mxu0 %v1366_v3  ;;  %1212 = vmatprep.subr.mxu1 %v1366_v3 }
  0x90   : > { %1190 = vmatpush3.xpose.msra.mxu0 %v416_v53  ;;  %1213 = vmatpush3.xpose.msra.mxu1 %v1494_v21 }
  0x91   : > { %1191 = vmatprep.subr.mxu0 %v1366_v3  ;;  %1214 = vmatprep.subr.mxu1 %v1366_v3 }
  0x94   : > { %1192 = vmatpush3.xpose.msra.mxu0 %v423_v62  ;;  %1215 = vmatpush3.xpose.msra.mxu1 %v1512_v29 }
  0x95   : > { %1193 = vmatprep.subr.mxu0 %v1366_v3  ;;  %1216 = vmatprep.subr.mxu1 %v1366_v3 }
  0x98   : > { %1194 = vmatpush3.xpose.msra.mxu0 %v430_v8  ;;  %1217 = vmatpush3.xpose.msra.mxu1 %v1529_v36 }
  0x99   : > { %1195 = vmatprep.subr.mxu0 %v1366_v3  ;;  %1218 = vmatprep.subr.mxu1 %v1366_v3 }
  0x9c   : > { %1196 = vmatpush3.xpose.msra.mxu0 %v437_v24  ;;  %1219 = vmatpush3.xpose.msra.mxu1 %v1546_v43 }
  0x9d   : > { %1197 = vmatprep.subr.mxu0 %v1366_v3  ;;  %1220 = vmatprep.subr.mxu1 %v1366_v3 }
  0xa0   : > { %1198 = vmatpush3.xpose.msra.mxu0 %v444_v32  ;;  %1221 = vmatpush3.xpose.msra.mxu1 %v1568_v51 }
  0xa1   : > { %1199 = vmatprep.subr.mxu0 %v1366_v3  ;;  %1222 = vmatprep.subr.mxu1 %v1366_v3 }
  0xa4   : > { %1200 = vmatpush3.xpose.msra.mxu0 %v451_v42  ;;  %1223 = vmatpush3.xpose.msra.mxu1 %v1581_v59 }
  0xa5   : > { %1224 = vmatprep.subr.mxu1 %v1366_v3 }
  0xa7   : > { %1202 = vmatmul.mubr.f32.vlgmr.msra.gmra.mxu0 %v1601_v5 }
  0xa8   : > { %1225 = vmatpush3.xpose.msra.mxu1 %v1598_v2 }
  0xa9   : > { %1226 = vmatprep.subr.mxu1 %v1366_v3 }
  0xac   : > { %1227 = vmatpush3.xpose.msra.mxu1 %v1613_v16 }
  0xaf   : > { %1229 = vmatmul.mubr.f32.vlgmr.msra.gmra.mxu1 %v1601_v5 }
 0x107   : > { %v359_v9 = vpop.f32.mrf.mxu0 }
 0x108   : > { %v360_v13 = vadd.f32 %v986_v10, %v359_v9 }
 0x109   : > { %v1095_v11 = vpop.f32.mrf.mxu0 }
 0x10f   : > { %v490_v14 = vpop.f32.mrf.mxu1 }
 0x110   : > { %v491_v15 = vadd.f32 %v490_v14, %v360_v13 }
 0x111   : > { %v1122_v17 = vpop.f32.mrf.mxu1 }
 0x137   : > { %v586_v19 = vpop.f32.mrf.mxu0 }
 0x138   : > { %v587_v29 = vadd.f32 %v586_v19, %v491_v15 }
 0x139   : > { %v1149_v20 = vpop.f32.mrf.mxu0 }
 0x13f   : > { %v671_v21 = vpop.f32.mrf.mxu1 }
 0x140   : > { %v672_v33 = vadd.f32 %v671_v21, %v587_v29 }
 0x141   : > { %v1176_v25 = vpop.f32.mrf.mxu1 }
 0x167   : > { %v778_v3 = vpop.f32.mrf.mxu0 }
 0x168   : > { %v779_v34 = vadd.f32 %v778_v3, %v672_v33 }
 0x169   : > { %v1203_v26 = vpop.f32.mrf.mxu0 }
 0x16f   : > { %v861_v36 = vpop.f32.mrf.mxu1 }
 0x170   : > { %v862_v37 = vadd.f32 %v861_v36, %v779_v34 }
 0x171   : > { %v1230_v40 = vpop.f32.mrf.mxu1 }
 0x172   : > { %866 = vst.msk [vmem:[%s202_s26] sm:$0xff] %vm865_vm2, %v862_v37 }
 0x173   : > { %1301 = shalt.err (!%p1298_p5)
}
 0x174   : > { %s1302_s8 = scalar_lea.hbm %s1785_s30, 128  ;;  %s1306_s11 = scalar_lea.hbm %s1828_s3, 256 }
 0x175   : > { %p1303_p6 = scmp.ne.s32.totalorder %s1785_s30, %s1302_s8  ;;  %p1307_p10 = scmp.lt.s32.totalorder %s1785_s30, %s1828_s3 }
 0x176   : > { %p1308_p11 = scmp.lt.s32.totalorder %s1306_s11, %s1302_s8 }
 0x177   : > { %p1304_p7 = pnand %p1303_p6, %p1429_p4 }
 0x178   : > { %p1309_p12 = por %p1308_p11, %p1307_p10 }
 0x179   : > { %p1305_p9 = pneg %p1304_p7 }
 0x17b   : > { %p1310_p13 = pnand %p1309_p12, %p1305_p9 }
 0x17d   : > { %1313 = shalt.err (!%p1310_p13)
}
 0x17e   : > { %1231 = dma.vmem_to_hbm [thread:$0]  (%p1429_p4), %s883_s27, 128, %s1785_s30, %s868_s4  }
 0x17f PF: > { %p1237_p0 = scmp.ge.s32.totalorder %s1364_s17, 2  ;;  %s894_s21 = sand.u32 1, %s1344_s12  }
 0x180   : > { %s895_s23 = scalar_lea.sflag [#allocation3], %s894_s21 }
 0x181   : > { %p1234_p1 = pnand %p1237_p0, %p1436_p8 }
 0x183   : > { %p1235_p2 = pneg %p1234_p1 }
 0x185   : > { %1339 = dma.done.wait (%p1235_p2), %s895_s23, 128  }
 0x186   : > { %1341 = vsyncadd (%p1235_p2), %s895_s23, 4294967168  ;;  %s16_s17 = sadd.s32 1, %s1364_s17   ;;  %s1831_s12 = smov %s1348_s13 }
 0x187   : > { %p13_p3 = scmp.ge.s32.totalorder %s16_s17, 4   ;;  %s1832_s13 = smov %s1352_s14 }
 0x188   : > { %s1833_s14 = smov %s1442_s25  ;;  %s1834_s15 = smov %s1360_s16 }
 0x189   : > { %s1835_s16 = smov %s1837_s20  ;;  %15 = sbr.rel (!%p13_p3) target bundleno = 4 (0x4), region = 73 }
 0x18e   :  { %900 = vsyncpa [#allocation3], 1 }
 0x18f   :  { %902 = vsyncpa [#allocation3 + $0x1], 1 }

</bundles_post_ra>
